<compile_context>
chip_gen: v7x
topology: tpu7x:2x2x1
jax: 0.10.0
libtpu: 0.0.40
codegen_flags: <defaults>
</compile_context>

<pallas_src>
import jax
import jax.numpy as jnp
import numpy as np
from jax.experimental import pallas as pl
from jax.experimental.pallas import tpu as pltpu


# ----------------------------------------------------------------------------
# Faithful forward: PyTorch body is `pass` -> returns None, no device work.
# ----------------------------------------------------------------------------
def your_model_forward(x):
    """Port of YourModel.forward: empty body, returns None (no computation)."""
    del x  # nothing to compute
    # TODO(synk): PyTorch forward body is `pass`; intentionally no kernel here.
    return None


# ----------------------------------------------------------------------------
# Test-only Pallas identity kernel (exercises the TPU kernel path).
# ----------------------------------------------------------------------------
def _copy_kernel(x_ref, o_ref):
    o_ref[...] = x_ref[...]


def _device_kind() -> str:
    try:
        return jax.devices()[0].device_kind.lower()
    except Exception:  # pragma: no cover - defensive only
        return ""


def _pick_block_bytes() -> int:
    """Generation-aware target block size (per review guidance)."""
    kind = _device_kind()
    if "v5" in kind:
        # v5e: ~820 GB/s HBM, 16 MiB scoped-VMEM default -> 1-2 MiB blocks.
        return 2 * 1024 * 1024
    if "v7" in kind:
        # v7x: 64 MiB physical VMEM, 2 TCs -> keep per-block footprint modest.
        return 4 * 1024 * 1024
    # v6e / default: single TC, 128 MiB VMEM -> bigger blocks, fewer steps.
    return 8 * 1024 * 1024


def _lane_dense_shape(total: int):
    """Pick (rows, lanes, pad) so the last dim is a lane-dense multiple of 128."""
    for lanes in (1024, 512, 256, 128):
        if total % lanes == 0:
            return total // lanes, lanes, 0
    pad = (-total) % 128
    return (total + pad) // 128, 128, pad


def _pallas_copy_2d(x2d):
    rows, lanes = x2d.shape
    itemsize = x2d.dtype.itemsize
    block_bytes = _pick_block_bytes()

    # Rows per block: as many as fit in the target block size, multiple of 8.
    block_rows = max(8, (block_bytes // (lanes * itemsize)) // 8 * 8)

    # v7x: make sure the parallel grid axis has >= 4 blocks so the two
    # TensorCores both get work (when the input is large enough to matter).
    if "v7" in _device_kind() and rows >= 32:
        quarter = max(8, (rows // 4) // 8 * 8)
        block_rows = min(block_rows, quarter)

    if block_rows >= rows:
        block_rows = rows  # full-extent block is always legal

    grid = (pl.cdiv(rows, block_rows),)

    # 2 specs (in + out) x 2 double-buffers x block, plus headroom.
    block_vmem = block_rows * lanes * itemsize
    vmem_limit = 4 * block_vmem + (4 << 20)
    vmem_limit = int(max(16 << 20, min(48 << 20, vmem_limit)))

    return pl.pallas_call(
        _copy_kernel,
        out_shape=jax.ShapeDtypeStruct(x2d.shape, x2d.dtype),
        grid=grid,
        in_specs=[pl.BlockSpec((block_rows, lanes), lambda i: (i, 0))],
        out_specs=pl.BlockSpec((block_rows, lanes), lambda i: (i, 0)),
        compiler_params=pltpu.CompilerParams(
            dimension_semantics=("parallel",),
            vmem_limit_bytes=vmem_limit,
        ),
    )(x2d)


@jax.jit
def pallas_identity(x):
    """Tiled identity copy through a Pallas kernel (test-only helper)."""
    orig_shape = x.shape
    total = x.size
    rows, lanes, pad = _lane_dense_shape(total)

    xf = x.reshape(-1)
    if pad:
        xf = jnp.concatenate([xf, jnp.zeros((pad,), dtype=x.dtype)])
    x2d = xf.reshape(rows, lanes)

    y2d = _pallas_copy_2d(x2d)

    yf = y2d.reshape(-1)
    if pad:
        yf = yf[:total]
    return yf.reshape(orig_shape)


if __name__ == "__main__":
    key = jax.random.PRNGKey(0)
    x = jax.random.normal(key, (2, 4, 16, 16), dtype=jnp.float32)

    # Forward semantics match PyTorch exactly: no computation, returns None.
    out = your_model_forward(x)
    assert out is None

    # --- test harness only: run the Pallas kernel and verify it ---
    y = pallas_identity(x)
    jax.block_until_ready(y)
    np.testing.assert_array_equal(np.asarray(y), np.asarray(x))

    # Also exercise the hardened non-multiple-of-128 (padded) path.
    x_odd = jax.random.normal(jax.random.PRNGKey(1), (3, 5, 7), dtype=jnp.float32)
    y_odd = pallas_identity(x_odd)
    jax.block_until_ready(y_odd)
    np.testing.assert_array_equal(np.asarray(y_odd), np.asarray(x_odd))

    print("KERNEL_OK")
</pallas_src>

<mosaic_0001>
module attributes {stable_mosaic.version = 11 : i64} {
  func.func @_copy_kernel(%arg0: i32, %arg1: memref<2x1024xf32, #tpu.memory_space<vmem>>, %arg2: memref<2x1024xf32, #tpu.memory_space<vmem>>) attributes {dimension_semantics = [#tpu.dimension_semantics<parallel>], iteration_bounds = array<i64: 1>, scalar_prefetch = 0 : i64, scratch_operands = 0 : i64, tpu.core_type = #tpu.core_type<tc>, window_params = [{transform_indices = @transform_0, window_bounds = array<i64: 2, 1024>}, {transform_indices = @transform_1, window_bounds = array<i64: 2, 1024>}]} {
    %c0 = arith.constant 0 : index
    %c0_0 = arith.constant 0 : index
    %0 = vector.load %arg1[%c0, %c0_0] : memref<2x1024xf32, #tpu.memory_space<vmem>>, vector<2x1024xf32>
    %c0_1 = arith.constant 0 : index
    %c0_2 = arith.constant 0 : index
    %1 = vector.load %arg2[%c0_1, %c0_2] : memref<2x1024xf32, #tpu.memory_space<vmem>>, vector<2x1024xf32>
    tpu.vector_store %arg2[%c0_1, %c0_2], %0 {strides = array<i32>} : memref<2x1024xf32, #tpu.memory_space<vmem>>, vector<2x1024xf32>,
    return
  }
  func.func @transform_0(%arg0: i32) -> (i32, i32) {
    %c0_i32 = arith.constant 0 : i32
    %c0_i32_0 = arith.constant 0 : i32
    return %arg0, %c0_i32 : i32, i32
  }
  func.func @transform_1(%arg0: i32) -> (i32, i32) {
    %c0_i32 = arith.constant 0 : i32
    %c0_i32_0 = arith.constant 0 : i32
    return %arg0, %c0_i32 : i32, i32
  }
}

</mosaic_0001>

<bundles_post_ra>
// kernel: pallas_identity.1
= control target key start
LH: loop header
LB: loop body
LE: loop exit
PB: predicated region body
PF: predicated region fallthrough
CT: control target
= control target key end

     0   :  { %s38_s0 = inlined_call_operand.vmem [shape: f32[2,1024], index: 0, kind: input, shape index: {}]   ;;  %s39_s1 = inlined_call_operand.vmem [shape: f32[2,1024], index: 1, kind: output, shape index: {}]  }
   0x1   :  { %v8_v0 = vld [vmem:[%s38_s0] sm:$0xff]  ;;  %v9_v1 = vld [vmem:[%s38_s0 + $0x8] sm:$0xff] }
   0x2   :  { %10 = vst [vmem:[%s39_s1] sm:$0xff] %v8_v0  ;;  %11 = vst [vmem:[%s39_s1 + $0x8] sm:$0xff] %v9_v1 }

</bundles_post_ra>
